<compile_context>
chip_gen: v7x
topology: tpu7x:2x2x1
jax: 0.10.0
libtpu: 0.0.40
codegen_flags: <defaults>
</compile_context>

<pallas_src>
import jax
import jax.numpy as jnp
from jax.experimental import pallas as pl
from jax.experimental.pallas import tpu as pltpu

ALPHA = 0.2  # LeakyReLU negative slope

H1 = 256
H2 = 64
H3 = 1


def _leaky_relu(x, alpha):
    return jnp.where(x > 0, x, alpha * x)


def _disc_kernel(x_ref, w1_ref, b1_ref, w2_ref, b2_ref, w3_ref, b3_ref, o_ref):
    # Layer 1: [tb, D](f32 -> bf16) @ [D, 256](bf16) -> f32 accum, + b1, LeakyReLU.
    xb = x_ref[...].astype(jnp.bfloat16)
    h = jnp.dot(xb, w1_ref[...].astype(jnp.bfloat16),
                preferred_element_type=jnp.float32)
    h = _leaky_relu(h + b1_ref[...], ALPHA)
    # Dropout(0.3): identity in eval mode.

    # Layer 2: [tb, 256](bf16) @ [256, 64](bf16) -> f32 accum, + b2, LeakyReLU.
    h = jnp.dot(h.astype(jnp.bfloat16), w2_ref[...].astype(jnp.bfloat16),
                preferred_element_type=jnp.float32)
    h = _leaky_relu(h + b2_ref[...], ALPHA)
    # Dropout(0.3): identity in eval mode.

    # Layer 3 (output width 1): f32 broadcast-multiply (VPU) + lane reduction (XLU),
    # + b3, Sigmoid (EUP).  Avoids a degenerate / zero-padded MXU matmul and keeps
    # the output block width-1 (tb*4 B writeback per tile).
    y = jnp.sum(h * w3_ref[...], axis=-1, keepdims=True) + b3_ref[...]
    o_ref[...] = jax.nn.sigmoid(y).astype(o_ref.dtype)


def _pick_tb(B):
    """Batch tile: multiple of 16 (bf16 sublanes), <=512 rows, and >=2 grid steps
    when the batch allows (so v7x megacore can split the batch across its 2 TCs)."""
    if B <= 16:
        return 16
    for cand in (512, 256, 128, 64, 32, 16):
        if 2 * cand <= B:
            return cand
    return 16


def _padded_bytes(rows, cols, dtype_bytes):
    """VMEM footprint of a 2-D buffer after (8, 128) layout padding."""
    r = -(-rows // 8) * 8
    c = -(-cols // 128) * 128
    return r * c * dtype_bytes


def _vmem_limit_bytes(tb, d_in):
    f32, bf = 4, 2
    # pallas_call buffers (double-buffered by default).
    per_buf = (
        _padded_bytes(tb, d_in, f32)      # x tile
        + _padded_bytes(d_in, H1, f32)    # W1
        + _padded_bytes(1, H1, f32)       # b1
        + _padded_bytes(H1, H2, f32)      # W2
        + _padded_bytes(1, H2, f32)       # b2
        + _padded_bytes(1, H2, f32)       # w3 row
        + _padded_bytes(1, 1, f32)        # b3
        + _padded_bytes(tb, H3, f32)      # out tile
    )
    # in-kernel temporaries (bf16 casts + f32 activations).
    interm = (
        _padded_bytes(tb, d_in, bf)
        + _padded_bytes(tb, H1, bf)
        + _padded_bytes(tb, H1, f32)
        + 2 * _padded_bytes(tb, H2, f32)
    )
    need = 2 * per_buf + interm
    return int(min(max(2 * need, 16 * 2**20), 64 * 2**20))


def discriminator_sever_forward(x, params, *, tb=None):
    """x: [B, D] float32; params: dict of w1,b1,w2,b2,w3,b3 (f32, [in,out] layout).

    Returns sigmoid logits of shape [B, 1] (float32).  Wrap with jax.jit in real use.
    """
    B, D = x.shape
    if tb is None:
        tb = _pick_tb(B)
    assert tb % 16 == 0, "tb must be a multiple of 16 (bf16 sublane packing)"

    # Pad batch to a multiple of tb (pad rows are discarded after the call).
    Bp = pl.cdiv(B, tb) * tb
    if Bp != B:
        x = jnp.pad(x, ((0, Bp - B), (0, 0)))

    w1, b1 = params["w1"], params["b1"]
    w2, b2 = params["w2"], params["b2"]
    w3_row = params["w3"].reshape(1, H2)   # (64, 1) -> (1, 64) row for broadcast-mul
    b3 = params["b3"]                      # (1, 1)

    grid = (Bp // tb,)
    out = pl.pallas_call(
        _disc_kernel,
        out_shape=jax.ShapeDtypeStruct((Bp, H3), jnp.float32),
        grid_spec=pltpu.PrefetchScalarGridSpec(
            num_scalar_prefetch=0,
            grid=grid,
            in_specs=[
                pl.BlockSpec((tb, D), lambda i: (i, 0)),       # x tile over batch
                pl.BlockSpec((D, H1), lambda i: (0, 0)),       # W1 (resident)
                pl.BlockSpec((1, H1), lambda i: (0, 0)),       # b1
                pl.BlockSpec((H1, H2), lambda i: (0, 0)),      # W2
                pl.BlockSpec((1, H2), lambda i: (0, 0)),       # b2
                pl.BlockSpec((1, H2), lambda i: (0, 0)),       # w3 row
                pl.BlockSpec((1, 1), lambda i: (0, 0)),        # b3
            ],
            out_specs=pl.BlockSpec((tb, H3), lambda i: (i, 0)),
        ),
        compiler_params=pltpu.CompilerParams(
            dimension_semantics=("parallel",),
            vmem_limit_bytes=_vmem_limit_bytes(tb, D),
        ),
    )(x, w1, b1, w2, b2, w3_row, b3)

    return out[:B]


def init_params(key, if_dim, n_clients):
    """Deterministic synthetic init (PyTorch Linear shapes, stored transposed [in,out])."""
    d_in = if_dim * n_clients
    ks = jax.random.split(key, 6)

    def lin_init(kw, kb, fan_in, fan_out):
        bound = 1.0 / jnp.sqrt(fan_in)
        w = jax.random.uniform(kw, (fan_in, fan_out), jnp.float32, -bound, bound)
        b = jax.random.uniform(kb, (1, fan_out), jnp.float32, -bound, bound)
        return w, b

    w1, b1 = lin_init(ks[0], ks[1], d_in, H1)
    w2, b2 = lin_init(ks[2], ks[3], H1, H2)
    w3, b3 = lin_init(ks[4], ks[5], H2, H3)
    return {"w1": w1, "b1": b1, "w2": w2, "b2": b2, "w3": w3, "b3": b3}


def reference_forward_f32(x, p):
    """Pure-JAX f32 reference (eval-mode dropout)."""
    h = x @ p["w1"] + p["b1"]
    h = jnp.where(h > 0, h, ALPHA * h)
    h = h @ p["w2"] + p["b2"]
    h = jnp.where(h > 0, h, ALPHA * h)
    h = h @ p["w3"] + p["b3"]
    return jax.nn.sigmoid(h)


def reference_forward_bf16(x, p):
    """Pure-JAX reference matching the kernel's numerics
    (bf16 MXU operands for layers 1/2, f32 accumulation, f32 final layer)."""
    bf = jnp.bfloat16
    h = jnp.dot(x.astype(bf), p["w1"].astype(bf),
                preferred_element_type=jnp.float32) + p["b1"]
    h = jnp.where(h > 0, h, ALPHA * h)
    h = jnp.dot(h.astype(bf), p["w2"].astype(bf),
                preferred_element_type=jnp.float32) + p["b2"]
    h = jnp.where(h > 0, h, ALPHA * h)
    h = h @ p["w3"] + p["b3"]
    return jax.nn.sigmoid(h)


if __name__ == "__main__":
    key = jax.random.PRNGKey(0)
    k_params, k_x = jax.random.split(key)

    if_dim = 16
    n_clients = 2
    batch = 32  # small, but gives 2 grid steps at tb=16 (engages both v7x TCs)
    d_in = if_dim * n_clients

    params = init_params(k_params, if_dim, n_clients)
    x = jax.random.normal(k_x, (batch, d_in), jnp.float32)

    # Main run: tb=16, grid=(2,).
    out = discriminator_sever_forward(x, params)
    out = jax.block_until_ready(out)

    assert out.shape == (batch, 1), out.shape
    assert bool(jnp.all(jnp.isfinite(out)))

    ref_bf = reference_forward_bf16(x, params)
    ref_f32 = reference_forward_f32(x, params)
    err_bf = float(jnp.max(jnp.abs(out - ref_bf)))
    err_f32 = float(jnp.max(jnp.abs(out - ref_f32)))
    assert err_bf < 2e-3, f"max abs err vs bf16-matched ref: {err_bf}"
    assert err_f32 < 5e-2, f"max abs err vs f32 ref: {err_f32}"

    # Ragged / tiny-batch path: exercises batch padding (B=5 -> padded to 16).
    x_small = x[:5]
    out_small = jax.block_until_ready(discriminator_sever_forward(x_small, params))
    assert out_small.shape == (5, 1), out_small.shape
    err_small = float(jnp.max(jnp.abs(out_small - ref_bf[:5])))
    assert err_small < 2e-3, f"padded-path max abs err: {err_small}"

    print("KERNEL_OK")
</pallas_src>

<mosaic_0001>
module attributes {stable_mosaic.version = 11 : i64} {
  func.func @_disc_kernel(%arg0: i32, %arg1: memref<16x32xf32, #tpu.memory_space<vmem>>, %arg2: memref<32x256xf32, #tpu.memory_space<vmem>>, %arg3: memref<1x256xf32, #tpu.memory_space<vmem>>, %arg4: memref<256x64xf32, #tpu.memory_space<vmem>>, %arg5: memref<1x64xf32, #tpu.memory_space<vmem>>, %arg6: memref<1x64xf32, #tpu.memory_space<vmem>>, %arg7: memref<1x1xf32, #tpu.memory_space<vmem>>, %arg8: memref<16x1xf32, #tpu.memory_space<vmem>>) attributes {dimension_semantics = [#tpu.dimension_semantics<parallel>], iteration_bounds = array<i64: 2>, scalar_prefetch = 0 : i64, scratch_operands = 0 : i64, tpu.core_type = #tpu.core_type<tc>, window_params = [{transform_indices = @transform_0, window_bounds = array<i64: 16, 32>}, {pipeline_mode = #tpu.pipeline_mode<synchronous>, transform_indices = @transform_1, window_bounds = array<i64: 32, 256>}, {pipeline_mode = #tpu.pipeline_mode<synchronous>, transform_indices = @transform_2, window_bounds = array<i64: 1, 256>}, {pipeline_mode = #tpu.pipeline_mode<synchronous>, transform_indices = @transform_3, window_bounds = array<i64: 256, 64>}, {pipeline_mode = #tpu.pipeline_mode<synchronous>, transform_indices = @transform_4, window_bounds = array<i64: 1, 64>}, {pipeline_mode = #tpu.pipeline_mode<synchronous>, transform_indices = @transform_5, window_bounds = array<i64: 1, 64>}, {pipeline_mode = #tpu.pipeline_mode<synchronous>, transform_indices = @transform_6, window_bounds = array<i64: 1, 1>}, {transform_indices = @transform_7, window_bounds = array<i64: 16, 1>}]} {
    %c0 = arith.constant 0 : index
    %c0_0 = arith.constant 0 : index
    %0 = vector.load %arg1[%c0, %c0_0] : memref<16x32xf32, #tpu.memory_space<vmem>>, vector<16x32xf32>
    %1 = arith.truncf %0 : vector<16x32xf32> to vector<16x32xbf16>
    %c0_1 = arith.constant 0 : index
    %c0_2 = arith.constant 0 : index
    %2 = vector.load %arg2[%c0_1, %c0_2] : memref<32x256xf32, #tpu.memory_space<vmem>>, vector<32x256xf32>
    %3 = arith.truncf %2 : vector<32x256xf32> to vector<32x256xbf16>
    %cst = arith.constant dense<0.000000e+00> : vector<16x256xf32>
    %4 = tpu.matmul %1, %3, %cst {dimension_numbers = #tpu.dot_dimension_numbers<[1], [0], [0], [1], [0, 0, 1, 1], [], []>} : vector<16x32xbf16>, vector<32x256xbf16>, vector<16x256xf32> -> vector<16x256xf32>
    %c0_3 = arith.constant 0 : index
    %c0_4 = arith.constant 0 : index
    %5 = vector.load %arg3[%c0_3, %c0_4] : memref<1x256xf32, #tpu.memory_space<vmem>>, vector<1x256xf32>
    %6 = vector.broadcast %5 : vector<1x256xf32> to vector<16x256xf32>
    %7 = arith.addf %4, %6 : vector<16x256xf32>
    %cst_5 = arith.constant 0.000000e+00 : f32
    %8 = vector.broadcast %cst_5 : f32 to vector<16x256xf32>
    %9 = arith.cmpf ogt, %7, %8 : vector<16x256xf32>
    %cst_6 = arith.constant 2.000000e-01 : f32
    %10 = vector.broadcast %cst_6 : f32 to vector<16x256xf32>
    %11 = arith.mulf %10, %7 : vector<16x256xf32>
    %12 = arith.select %9, %7, %11 : vector<16x256xi1>, vector<16x256xf32>
    %13 = arith.truncf %12 : vector<16x256xf32> to vector<16x256xbf16>
    %c0_7 = arith.constant 0 : index
    %c0_8 = arith.constant 0 : index
    %14 = vector.load %arg4[%c0_7, %c0_8] : memref<256x64xf32, #tpu.memory_space<vmem>>, vector<256x64xf32>
    %15 = arith.truncf %14 : vector<256x64xf32> to vector<256x64xbf16>
    %cst_9 = arith.constant dense<0.000000e+00> : vector<16x64xf32>
    %16 = tpu.matmul %13, %15, %cst_9 {dimension_numbers = #tpu.dot_dimension_numbers<[1], [0], [0], [1], [0, 0, 1, 1], [], []>} : vector<16x256xbf16>, vector<256x64xbf16>, vector<16x64xf32> -> vector<16x64xf32>
    %c0_10 = arith.constant 0 : index
    %c0_11 = arith.constant 0 : index
    %17 = vector.load %arg5[%c0_10, %c0_11] : memref<1x64xf32, #tpu.memory_space<vmem>>, vector<1x64xf32>
    %18 = vector.broadcast %17 : vector<1x64xf32> to vector<16x64xf32>
    %19 = arith.addf %16, %18 : vector<16x64xf32>
    %cst_12 = arith.constant 0.000000e+00 : f32
    %20 = vector.broadcast %cst_12 : f32 to vector<16x64xf32>
    %21 = arith.cmpf ogt, %19, %20 : vector<16x64xf32>
    %cst_13 = arith.constant 2.000000e-01 : f32
    %22 = vector.broadcast %cst_13 : f32 to vector<16x64xf32>
    %23 = arith.mulf %22, %19 : vector<16x64xf32>
    %24 = arith.select %21, %19, %23 : vector<16x64xi1>, vector<16x64xf32>
    %c0_14 = arith.constant 0 : index
    %c0_15 = arith.constant 0 : index
    %25 = vector.load %arg6[%c0_14, %c0_15] : memref<1x64xf32, #tpu.memory_space<vmem>>, vector<1x64xf32>
    %26 = vector.broadcast %25 : vector<1x64xf32> to vector<16x64xf32>
    %27 = arith.mulf %24, %26 : vector<16x64xf32>
    %cst_16 = arith.constant dense<0.000000e+00> : vector<16xf32>
    %28 = vector.multi_reduction <add>, %27, %cst_16 [1] : vector<16x64xf32> to vector<16xf32>
    %29 = vector.shape_cast %28 : vector<16xf32> to vector<16x1xf32>
    %c0_17 = arith.constant 0 : index
    %c0_18 = arith.constant 0 : index
    %30 = vector.load %arg7[%c0_17, %c0_18] : memref<1x1xf32, #tpu.memory_space<vmem>>, vector<1x1xf32>
    %31 = vector.broadcast %30 : vector<1x1xf32> to vector<16x1xf32>
    %32 = arith.addf %29, %31 : vector<16x1xf32>
    %33 = arith.negf %32 : vector<16x1xf32>
    %34 = math.exp %33 : vector<16x1xf32>
    %cst_19 = arith.constant 1.000000e+00 : f32
    %35 = vector.broadcast %cst_19 : f32 to vector<16x1xf32>
    %36 = arith.addf %35, %34 : vector<16x1xf32>
    %37 = arith.divf %35, %36 : vector<16x1xf32>
    %c0_20 = arith.constant 0 : index
    %c0_21 = arith.constant 0 : index
    %38 = vector.load %arg8[%c0_20, %c0_21] : memref<16x1xf32, #tpu.memory_space<vmem>>, vector<16x1xf32>
    tpu.vector_store %arg8[%c0_20, %c0_21], %37 {strides = array<i32>} : memref<16x1xf32, #tpu.memory_space<vmem>>, vector<16x1xf32>,
    return
  }
  func.func @transform_0(%arg0: i32) -> (i32, i32) {
    %c0_i32 = arith.constant 0 : i32
    %c0_i32_0 = arith.constant 0 : i32
    return %arg0, %c0_i32 : i32, i32
  }
  func.func @transform_1(%arg0: i32) -> (i32, i32) {
    %c0_i32 = arith.constant 0 : i32
    %c0_i32_0 = arith.constant 0 : i32
    %c0_i32_1 = arith.constant 0 : i32
    return %c0_i32, %c0_i32_0 : i32, i32
  }
  func.func @transform_2(%arg0: i32) -> (i32, i32) {
    %c0_i32 = arith.constant 0 : i32
    %c0_i32_0 = arith.constant 0 : i32
    %c0_i32_1 = arith.constant 0 : i32
    return %c0_i32, %c0_i32_0 : i32, i32
  }
  func.func @transform_3(%arg0: i32) -> (i32, i32) {
    %c0_i32 = arith.constant 0 : i32
    %c0_i32_0 = arith.constant 0 : i32
    %c0_i32_1 = arith.constant 0 : i32
    return %c0_i32, %c0_i32_0 : i32, i32
  }
  func.func @transform_4(%arg0: i32) -> (i32, i32) {
    %c0_i32 = arith.constant 0 : i32
    %c0_i32_0 = arith.constant 0 : i32
    %c0_i32_1 = arith.constant 0 : i32
    return %c0_i32, %c0_i32_0 : i32, i32
  }
  func.func @transform_5(%arg0: i32) -> (i32, i32) {
    %c0_i32 = arith.constant 0 : i32
    %c0_i32_0 = arith.constant 0 : i32
    %c0_i32_1 = arith.constant 0 : i32
    return %c0_i32, %c0_i32_0 : i32, i32
  }
  func.func @transform_6(%arg0: i32) -> (i32, i32) {
    %c0_i32 = arith.constant 0 : i32
    %c0_i32_0 = arith.constant 0 : i32
    %c0_i32_1 = arith.constant 0 : i32
    return %c0_i32, %c0_i32_0 : i32, i32
  }
  func.func @transform_7(%arg0: i32) -> (i32, i32) {
    %c0_i32 = arith.constant 0 : i32
    %c0_i32_0 = arith.constant 0 : i32
    return %arg0, %c0_i32 : i32, i32
  }
}

</mosaic_0001>

<bundles_post_ra>
// kernel: tpu_custom_call.1
= control target key start
LH: loop header
LB: loop body
LE: loop exit
PB: predicated region body
PF: predicated region fallthrough
CT: control target
= control target key end

     0   :  { %s679_s26 = smov 0   ;;  %s832_s0 = inlined_call_operand.vmem [shape: f32[32,32], index: 0, kind: input, shape index: {}]   ;;  %s833_s1 = inlined_call_operand.vmem [shape: f32[32,256], index: 1, kind: input, shape index: {}]   ;;  %s834_s2 = inlined_call_operand.vmem [shape: f32[1,256], index: 2, kind: input, shape index: {}]   ;;  %s835_s3 = inlined_call_operand.vmem [shape: f32[256,64], index: 3, kind: input, shape index: {}]   ;;  %s836_s4 = inlined_call_operand.vmem [shape: f32[1,64], index: 4, kind: input, shape index: {}]   ;;  %s837_s5 = inlined_call_operand.vmem [shape: f32[1,64], index: 5, kind: input, shape index: {}]   ;;  %s838_s6 = inlined_call_operand.<no memory space> [shape: f32[1,1], index: 6, kind: input, shape index: {}]   ;;  %s839_s7 = inlined_call_operand.vmem [shape: f32[32,1], index: 7, kind: output, shape index: {}]  }
   0x1   :  { %v12_v0 = vstv %s838_s6 }
   0x2   :  { %13 = vst [vmem:[#allocation2] sm:$0x1] %v12_v0 }
   0x3 LB: > { %s571_s27 = sadd.s32 4294967295, %s633_s26   ;;  %p575_p0 = scmp.ge.s32.totalorder %s633_s26, 1  ;;  %s633_s26 = sphi %s679_s26, %s19_s26  }
   0x4   : > { %p240_p1 = scmp.lt.s32.totalorder %s633_s26, 3 }
   0x6   : > { %p241_p2 = pnand %p575_p0, %p240_p1 }
   0x7   : > { %v289_v1 = vld [vmem:[%s833_s1 + $0x8] sm:$0xff] (!%p241_p2)  ;;  %v291_v2 = vld [vmem:[%s833_s1 + $0x18] sm:$0xff] (!%p241_p2)  ;;  %v288_v3 = vld [vmem:[%s833_s1] sm:$0xff] (!%p241_p2)  ;;  %s576_s10 = sshll.u32 (!%p241_p2), %s571_s27, 1  ;;  %v635_v8 = vmov (!%p241_p2), 0   ;;  %vm312_vm0 = vcmask (!%p241_p2), 261120  }
   0x8   : > { %244 = sbr.rel (%p241_p2) target bundleno = 642 (0x282), region = 48  ;;  %v297_v4 = vpack.c.bf16 (!%p241_p2), %v291_v2, %v289_v1  ;;  %v290_v5 = vld [vmem:[%s833_s1 + $0x10] sm:$0xff] (!%p241_p2)  ;;  %v293_v6 = vld [vmem:[%s833_s1 + $0x28] sm:$0xff] (!%p241_p2)  ;;  %v295_v7 = vld [vmem:[%s833_s1 + $0x38] sm:$0xff] (!%p241_p2)  ;;  %348 = vmatprep.mubr.bf16.mxu0 (!%p241_p2), %v635_v8  ;;  %p273_p3 = scmp.lt.s32.totalorder (!%p241_p2), %s576_s10, 3  ;;  %v302_v1 = vlaneseq (!%p241_p2)  ;;  %vm484_vm6 = vcmask (!%p241_p2), 523264  }
   0x9   : > { %v296_v9 = vpack.c.bf16 (!%p241_p2), %v290_v5, %v288_v3  ;;  %v299_v10 = vpack.c.bf16 (!%p241_p2), %v295_v7, %v293_v6  ;;  %v292_v11 = vld [vmem:[%s833_s1 + $0x20] sm:$0xff] (!%p241_p2)  ;;  %v294_v12 = vld [vmem:[%s833_s1 + $0x30] sm:$0xff] (!%p241_p2)  ;;  %v390_v14 = vld [vmem:[%s835_s3 + $0x88] sm:$0xff] (!%p241_p2)  ;;  %vm512_vm8 = vcmask (!%p241_p2), 7168  }
   0xa   : > { %v389_v13 = vld [vmem:[%s835_s3 + $0x80] sm:$0xff] (!%p241_p2)  ;;  %316 = vmatprep.subr.bf16.mxu0 (!%p241_p2), %v297_v4  ;;  %v374_v16 = vld [vmem:[%s835_s3 + $0x8] sm:$0xff] (!%p241_p2)  ;;  %v298_v17 = vpack.c.bf16 (!%p241_p2), %v294_v12, %v292_v11  ;;  %v391_v20 = vld [vmem:[%s835_s3 + $0x90] sm:$0xff] (!%p241_p2)  ;;  %v303_v2 = vshrl.u32 (!%p241_p2), %v302_v1, 7 }
   0xb   : > { %v373_v15 = vld [vmem:[%s835_s3] sm:$0xff] (!%p241_p2)  ;;  %317 = vmatpush1.bf16.msra.mxu0 (!%p241_p2), %v296_v9  ;;  %v413_v18 = vpack.c.bf16 (!%p241_p2), %v390_v14, %v389_v13  ;;  %v392_v21 = vld [vmem:[%s835_s3 + $0x98] sm:$0xff] (!%p241_p2)  ;;  %v375_v22 = vld [vmem:[%s835_s3 + $0x10] sm:$0xff] (!%p241_p2) }
   0xc   : > { %v405_v19 = vpack.c.bf16 (!%p241_p2), %v374_v16, %v373_v15  ;;  %318 = vmatprep.subr.bf16.mxu0 (!%p241_p2), %v299_v10  ;;  %v414_v23 = vpack.c.bf16 (!%p241_p2), %v392_v21, %v391_v20  ;;  %v376_v24 = vld [vmem:[%s835_s3 + $0x18] sm:$0xff] (!%p241_p2)  ;;  %v393_v25 = vld [vmem:[%s835_s3 + $0xa0] sm:$0xff] (!%p241_p2)  ;;  %v394_v26 = vld [vmem:[%s835_s3 + $0xa8] sm:$0xff] (!%p241_p2)  ;;  %v304_v3 = vsub.s32 (!%p241_p2), 0, %v303_v2  ;;  %v308_v5 = vsub.s32 (!%p241_p2), 1, %v303_v2 }
   0xd   : > { %588 = vmatprep.subr.bf16.mxu1 (!%p241_p2), %v413_v18  ;;  %v406_v29 = vpack.c.bf16 (!%p241_p2), %v376_v24, %v375_v22  ;;  %v415_v31 = vpack.c.bf16 (!%p241_p2), %v394_v26, %v393_v25  ;;  %v377_v32 = vld [vmem:[%s835_s3 + $0x20] sm:$0xff] (!%p241_p2)  ;;  %v378_v33 = vld [vmem:[%s835_s3 + $0x28] sm:$0xff] (!%p241_p2)  ;;  %v395_v34 = vld [vmem:[%s835_s3 + $0xb0] sm:$0xff] (!%p241_p2) }
   0xe   : > { %589 = vmatpush3.bf16.msra.mxu1 (!%p241_p2), %v405_v19  ;;  %v396_v35 = vld [vmem:[%s835_s3 + $0xb8] sm:$0xff] (!%p241_p2)  ;;  %v407_v36 = vpack.c.bf16 (!%p241_p2), %v378_v33, %v377_v32  ;;  %v379_v38 = vld [vmem:[%s835_s3 + $0x30] sm:$0xff] (!%p241_p2)  ;;  %v397_v40 = vld [vmem:[%s835_s3 + $0xc0] sm:$0xff] (!%p241_p2) }
   0xf   : > { %s841_s10 = smov (!%p273_p3, %s576_s10), 3  ;;  %319 = vmatpush1.bf16.msra.mxu0 %v298_v17  ;;  %590 = vmatprep.subr.bf16.mxu1 %v414_v23  ;;  %v416_v37 = vpack.c.bf16 %v396_v35, %v395_v34  ;;  %v380_v39 = vld [vmem:[%s835_s3 + $0x38] sm:$0xff]  ;;  %v398_v41 = vld [vmem:[%s835_s3 + $0xc8] sm:$0xff]  ;;  %v381_v44 = vld [vmem:[%s835_s3 + $0x40] sm:$0xff] }
  0x10   : > { %s577_s13 = sshll.u32 %s841_s10, 3  ;;  %v408_v42 = vpack.c.bf16 %v380_v39, %v379_v38  ;;  %v417_v43 = vpack.c.bf16 %v398_v41, %v397_v40  ;;  %v382_v45 = vld [vmem:[%s835_s3 + $0x48] sm:$0xff]  ;;  %v399_v47 = vld [vmem:[%s835_s3 + $0xd0] sm:$0xff]  ;;  %v400_v48 = vld [vmem:[%s835_s3 + $0xd8] sm:$0xff] }
  0x11   : > { %s276_s22 = scalar_lea.vmem %s832_s0, %s577_s13  ;;  %v409_v46 = vpack.c.bf16 %v382_v45, %v381_v44  ;;  %v418_v49 = vpack.c.bf16 %v400_v48, %v399_v47  ;;  %v383_v50 = vld [vmem:[%s835_s3 + $0x50] sm:$0xff]  ;;  %v384_v51 = vld [vmem:[%s835_s3 + $0x58] sm:$0xff]  ;;  %v401_v53 = vld [vmem:[%s835_s3 + $0xe0] sm:$0xff]  ;;  %s282_s11 = scalar_lea.vmem %s839_s7, %s577_s13 }
  0x12   : > { %v285_v27 = vld [vmem:[%s276_s22] sm:$0xff]  ;;  %v286_v28 = vld [vmem:[%s276_s22 + $0x8] sm:$0xff]  ;;  %591 = vmatpush3.bf16.msra.mxu1 %v406_v29  ;;  %v410_v52 = vpack.c.bf16 %v384_v51, %v383_v50  ;;  %v403_v59 = vld [vmem:[%s835_s3 + $0xf0] sm:$0xff] }
  0x13   : > { %v287_v30 = vpack.c.bf16 %v286_v28, %v285_v27  ;;  %592 = vmatprep.subr.bf16.mxu1 %v415_v31  ;;  %v402_v54 = vld [vmem:[%s835_s3 + $0xe8] sm:$0xff]  ;;  %v385_v56 = vld [vmem:[%s835_s3 + $0x60] sm:$0xff]  ;;  %v404_v60 = vld [vmem:[%s835_s3 + $0xf8] sm:$0xff] }
  0x14   : > { %v419_v55 = vpack.c.bf16 %v402_v54, %v401_v53  ;;  %v386_v57 = vld [vmem:[%s835_s3 + $0x68] sm:$0xff]  ;;  %v420_v61 = vpack.c.bf16 %v404_v60, %v403_v59  ;;  %v387_v62 = vld [vmem:[%s835_s3 + $0x70] sm:$0xff]  ;;  %v388_v63 = vld [vmem:[%s835_s3 + $0x78] sm:$0xff] }
  0x15   : > { %580 = vmatmul.mubr.msk.bf16.vlgmr.msra.gmra.mrb[0].mxu0 %vm312_vm0, %v287_v30  ;;  %v411_v58 = vpack.c.bf16 %v386_v57, %v385_v56  ;;  %v412_v0 = vpack.c.bf16 %v388_v63, %v387_v62  ;;  %v300_v4 = vld [vmem:[%s834_s2] sm:$0x3] }
  0x16   : > { %593 = vmatpush3.bf16.msra.mxu1 %v407_v36  ;;  %v305_v6 = vrot.slane %v300_v4, %v304_v3  ;;  %v309_v7 = vrot.slane %v300_v4, %v308_v5  ;;  %v581_v27 = vld [vmem:[%s836_s4] ss:$0 sm:$0xff] }
  0x17   : > { %594 = vmatprep.subr.bf16.mxu1 %v416_v37  ;;  %v582_v36 = vld [vmem:[%s837_s5] ss:$0 sm:$0xff] }
  0x18   : > { %v583_v44 = vld [vmem:[#allocation2] ss:$0 sm:$0xff] }
  0x1a   : > { %595 = vmatpush3.bf16.msra.mxu1 %v408_v42 }
  0x1b   : > { %596 = vmatprep.subr.bf16.mxu1 %v417_v43 }
  0x1e   : > { %597 = vmatpush3.bf16.msra.mxu1 %v409_v46 }
  0x1f   : > { %598 = vmatprep.subr.bf16.mxu1 %v418_v49 }
  0x22   : > { %599 = vmatpush3.bf16.msra.mxu1 %v410_v52 }
  0x23   : > { %600 = vmatprep.subr.bf16.mxu1 %v419_v55 }
  0x26   : > { %601 = vmatpush3.bf16.msra.mxu1 %v411_v58 }
  0x27   : > { %602 = vmatprep.subr.bf16.mxu1 %v420_v61 }
  0x2a   : > { %603 = vmatpush3.bf16.msra.mxu1 %v412_v0 }
  0xe8   : > { %v350_v8 = vpop.f32.mrb[0].mxu0 }
  0xe9   : > { %v351_v9 = vadd.f32 %v350_v8, %v305_v6  ;;  %v352_v10 = vpop.f32.mrb[1].mxu0 }
  0xea   : > { %v353_v11 = vadd.f32 %v352_v10, %v309_v7  ;;  %v354_v12 = vpop.f32.mrb[2].mxu0 }
  0xeb   : > { %v363_v13 = vmul.f32 0.2, %v351_v9  ;;  %v355_v14 = vadd.f32 %v354_v12, %v305_v6  ;;  %v356_v15 = vpop.f32.mrb[3].mxu0  ;;  %vm359_vm1 = vcmp.gt.f32.partialorder %v351_v9, 0.0 }
  0xec   : > { %v364_v16 = vmul.f32 0.2, %v353_v11  ;;  %v357_v17 = vadd.f32 %v356_v15, %v309_v7  ;;  %vm360_vm3 = vcmp.gt.f32.partialorder %v353_v11, 0.0 }
  0xed   : > { %vm361_vm2 = vcmp.gt.f32.partialorder %v355_v14, 0.0  ;;  %v365_v18 = vmul.f32 0.2, %v355_v14  ;;  %v367_v20 = vsel %vm359_vm1, %v351_v9, %v363_v13 }
  0xee   : > { %v366_v19 = vmul.f32 0.2, %v357_v17  ;;  %vm362_vm4 = vcmp.gt.f32.partialorder %v357_v17, 0.0  ;;  %v368_v22 = vsel %vm360_vm3, %v353_v11, %v364_v16 }
  0xef   : > { %v369_v21 = vsel %vm361_vm2, %v355_v14, %v365_v18 }
  0xf0   : > { %v370_v23 = vsel %vm362_vm4, %v357_v17, %v366_v19  ;;  %v371_v24 = vpack.c.bf16 %v369_v21, %v367_v20 }
  0xf1   : > { %v372_v25 = vpack.c.bf16 %v370_v23, %v368_v22 }
  0xf3   : > { %460 = vmatprep.mubr.bf16.mxu1 %v372_v25 }
  0xf4   : > { %461 = vmatmul.mubr.bf16.vlgmr.msra.gmra.mrb[0].mxu1 %v371_v24 }
 0x1c7   : > { %v604_v26 = vpop.f32.mrb[0].mxu1 }
 0x1c8   : > { %v605_v28 = vpop.f32.mrb[1].mxu1 }
 0x1c9   : > { %v606_v29 = vadd.f32 %v605_v28, %v604_v26  ;;  %v607_v30 = vpop.f32.mrb[2].mxu1 }
 0x1ca   : > { %v608_v31 = vpop.f32.mrb[3].mxu1 }
 0x1cb   : > { %v463_v32 = vadd.f32 %v606_v29, %v581_v27  ;;  %v609_v33 = vadd.f32 %v608_v31, %v607_v30 }
 0x1cd   : > { %v471_v34 = vmul.f32 0.2, %v463_v32  ;;  %v466_v35 = vadd.f32 %v609_v33, %v581_v27  ;;  %vm469_vm5 = vcmp.gt.f32.partialorder %v463_v32, 0.0 }
 0x1cf   : > { %v472_v37 = vmul.f32 0.2, %v466_v35  ;;  %v473_v38 = vsel %vm469_vm5, %v463_v32, %v471_v34  ;;  %vm470_vm7 = vcmp.gt.f32.partialorder %v466_v35, 0.0 }
 0x1d0   : > { %v482_v39 = vmul.f32 %v582_v36, %v473_v38 }
 0x1d1   : > { %v474_v40 = vsel %vm470_vm7, %v466_v35, %v472_v37 }
 0x1d2   : > { %v485_v41 = vsel %vm484_vm6, %v482_v39, 0.0  ;;  %v483_v42 = vmul.f32 %v582_v36, %v474_v40 }
 0x1d3   : > { %486 = vadd.xlane.f32.xlu0 %v485_v41 }
 0x1d4   : > { %v488_v43 = vsel %vm484_vm6, %v483_v42, 0.0 }
 0x1d7   : > { %489 = vadd.xlane.f32.xlu0 %v488_v43 }
 0x260   : > { %v487_v45 = vpop.xlane.xlu0 %486 }
 0x261   : > { %v498_v46 = vadd.f32 %v583_v44, %v487_v45 }
 0x263   : > { %v584_v47 = vmul.f32 -1.442695, %v498_v46 }
 0x264   : > { %v490_v48 = vpop.xlane.xlu0 %489 }
 0x265   : > { %619 = vpow2.f32 %v584_v47  ;;  %v499_v49 = vadd.f32 %v583_v44, %v490_v48 }
 0x267   : > { %v585_v50 = vmul.f32 -1.442695, %v499_v49 }
 0x269   : > { %621 = vpow2.f32 %v585_v50 }
 0x26f   : > { %v620_v51 = vpop.eup %619 }
 0x270   : > { %v506_v52 = vadd.f32 1.0, %v620_v51 }
 0x272   : > { %623 = vrcp.f32 %v506_v52 }
 0x273   : > { %v622_v53 = vpop.eup %621 }
 0x274   : > { %v507_v54 = vadd.f32 1.0, %v622_v53 }
 0x276   : > { %625 = vrcp.f32 %v507_v54 }
 0x27c   : > { %v624_v55 = vpop.eup %623 }
 0x27d   : > { %513 = vst.msk [vmem:[%s282_s11] sm:$0xff] %vm512_vm8, %v624_v55 }
 0x280   : > { %v626_v56 = vpop.eup %625 }
 0x281   : > { %514 = vst.msk [vmem:[%s282_s11 + $0x8] sm:$0xff] %vm512_vm8, %v626_v56 }
 0x282 PF: > { %s19_s26 = sadd.s32 1, %s633_s26  }
 0x283   : > { %p16_p4 = scmp.ge.s32.totalorder %s19_s26, 4  }
 0x285   :  { %18 = sbr.rel (!%p16_p4) target bundleno = 3 (0x3), region = 78 }

</bundles_post_ra>
